<compile_context>
chip_gen: v5e
topology: v5e:2x2
jax: 0.10.0
libtpu: 0.0.40
codegen_flags: <defaults>
</compile_context>

<pallas_src>
import functools

import jax
import jax.numpy as jnp
from jax.experimental import pallas as pl
from jax.experimental.pallas import tpu as pltpu


def _round_up(x: int, m: int) -> int:
    return ((x + m - 1) // m) * m


def _vmem_tile_bytes(rows: int, cols: int, dtype) -> int:
    """(sublane, lane)-padded VMEM footprint of one 2-D slab."""
    itemsize = jnp.dtype(dtype).itemsize
    packing = max(1, 4 // itemsize)
    return _round_up(rows, 8 * packing) * _round_up(cols, 128) * itemsize


def ctc_head_kernel(h_ref, cw_ref, cb_ref, w1_ref, b1_ref, w2_ref, b2_ref, o_ref):
    # h_ref:  [TB, S, D]   encoder encodings tile, native dtype (bf16) -- no f32 cast
    # cw_ref: [1, 8, D]    conv weight slab (row 0 = weight, rows 1..7 = 0), bf16
    # cb_ref: [1, 1]       conv bias, SMEM scalar (f32)
    # w1_ref: [S, H0p]     Linear(S -> H0) weight, bf16, lane-padded
    # b1_ref: [1, H0p]     f32
    # w2_ref: [H0p, Lp]    Linear(H0 -> L) weight, bf16, zero-padded rows/cols
    # b2_ref: [1, Lp]      f32
    # o_ref:  [TB, Lp]     lane-dense f32 output tile
    tb, _, d = h_ref.shape
    h = h_ref[...]  # stays bf16; products go straight to the MXU with f32 accumulation

    # Conv2d(1, 1, (1, D)) == per-position dot over D (+ bias).  Batched MXU matmul
    # against the 8-row slab; the 7 zero rows drop out in the 8-lane reduction, so no
    # [TB, S, D]-sized f32 intermediate is ever materialized.
    cwb = jnp.broadcast_to(cw_ref[...], (tb, 8, d))                      # tiny bf16
    x3 = jnp.einsum("bsd,bkd->bsk", h, cwb,
                    preferred_element_type=jnp.float32)                  # [TB, S, 8] f32
    x = jnp.sum(x3, axis=-1) + cb_ref[0, 0]                              # [TB, S]  f32

    # pred_head: ReLU -> Linear(S, H0) -> ReLU -> Dropout(identity) -> Linear(H0, L)
    x = jnp.maximum(x, 0.0).astype(w1_ref.dtype)                         # bf16 MXU operand
    y = jnp.dot(x, w1_ref[...], preferred_element_type=jnp.float32) + b1_ref[...]
    y = jnp.maximum(y, 0.0).astype(w2_ref.dtype)
    z = jnp.dot(y, w2_ref[...], preferred_element_type=jnp.float32) + b2_ref[...]
    o_ref[...] = z.astype(o_ref.dtype)


@functools.partial(jax.jit, static_argnames=("block_b",))
def ctc_forward(h, conv_w, conv_b, w1, b1, w2, b2, *, block_b=None):
    B, S, D = h.shape
    H0 = w1.shape[1]
    L = w2.shape[1]
    f32 = jnp.float32
    wdt = jnp.bfloat16

    # Lane-pad the head so both matmuls and the output store are full-width.
    H0p = _round_up(H0, 128)
    Lp = _round_up(L, 128)

    # ---- generation-aware VMEM budget --------------------------------------
    try:
        vmem_cap = int(pltpu.get_tpu_info().vmem_capacity_bytes)
    except Exception:
        vmem_cap = 64 << 20                       # conservative (v7x-sized) fallback
    vmem_limit = min(vmem_cap * 3 // 4, 96 << 20)  # ~48 MiB on v7x, ~96 MiB on v5e/v6e

    # Constant-index weight tiles are still double-buffered by the pipeline -> charge 2x.
    w_bytes = 2 * (
        _vmem_tile_bytes(8, D, wdt)          # conv weight slab
        + _vmem_tile_bytes(S, H0p, wdt)      # w1
        + _vmem_tile_bytes(1, H0p, f32)      # b1
        + _vmem_tile_bytes(H0p, Lp, wdt)     # w2
        + _vmem_tile_bytes(1, Lp, f32)       # b2
    )
    # Per-batch-row cost: double-buffered h row + f32 conv transients + 2x output row.
    h_row = _vmem_tile_bytes(S, D, h.dtype)
    tmp_row = _vmem_tile_bytes(S, 8, f32) + 2 * _vmem_tile_bytes(1, S, f32)
    out_row = 2 * _vmem_tile_bytes(1, Lp, f32)
    row_bytes = 2 * h_row + tmp_row + out_row

    budget = vmem_limit - w_bytes - (2 << 20)     # 2 MiB slack for compiler scratch
    tb_fit = (budget // row_bytes) // 8 * 8
    if tb_fit < 8:
        raise ValueError(
            "CTC head tile does not fit in VMEM: an 8-row h block plus weights needs "
            f"{8 * row_bytes + w_bytes} bytes against a {vmem_limit}-byte limit; "
            "reduce max_seq_len/dim or split the sequence axis.")

    tb = min(tb_fit, _round_up(B, 8))
    if _round_up(B, 8) > 8:
        # >= 2 grid steps: shards across both v7x TensorCores and primes the pipeline.
        tb = min(tb, _round_up(pl.cdiv(B, 2), 8))
    if block_b is not None:
        tb = min(max(8, _round_up(block_b, 8)), tb_fit)

    grid = (pl.cdiv(B, tb),)

    # ---- weight / bias packing (tiny, host-side).  h itself is passed through
    #      untouched: no zero-pad copy of the dominant HBM operand. ------------
    cw_p = jnp.zeros((1, 8, D), wdt).at[0, 0, :].set(conv_w.reshape(-1).astype(wdt))
    cb_p = conv_b.reshape(1, 1).astype(f32)
    w1_p = jnp.zeros((S, H0p), wdt).at[:, :H0].set(w1.astype(wdt))
    b1_p = jnp.zeros((1, H0p), f32).at[:, :H0].set(b1.reshape(1, -1).astype(f32))
    w2_p = jnp.zeros((H0p, Lp), wdt).at[:H0, :L].set(w2.astype(wdt))
    b2_p = jnp.zeros((1, Lp), f32).at[:, :L].set(b2.reshape(1, -1).astype(f32))

    out = pl.pallas_call(
        ctc_head_kernel,
        out_shape=jax.ShapeDtypeStruct((B, Lp), f32),
        grid_spec=pltpu.PrefetchScalarGridSpec(
            num_scalar_prefetch=0,
            grid=grid,
            in_specs=[
                # h: pipelined / double-buffered batch tiles; ragged tail handled by
                # Pallas boundary masking (no host-side pad).
                pl.BlockSpec((tb, S, D), lambda b: (b, 0, 0)),
                # Weights: constant index maps -> DMA'd once, VMEM-resident.
                pl.BlockSpec((1, 8, D), lambda b: (0, 0, 0)),
                pl.BlockSpec(memory_space=pltpu.MemorySpace.SMEM),  # conv bias scalar
                pl.BlockSpec((S, H0p), lambda b: (0, 0)),
                pl.BlockSpec((1, H0p), lambda b: (0, 0)),
                pl.BlockSpec((H0p, Lp), lambda b: (0, 0)),
                pl.BlockSpec((1, Lp), lambda b: (0, 0)),
            ],
            out_specs=pl.BlockSpec((tb, Lp), lambda b: (b, 0)),
        ),
        compiler_params=pltpu.CompilerParams(
            dimension_semantics=("parallel",),
            vmem_limit_bytes=int(vmem_limit),
        ),
    )(h, cw_p, cb_p, w1_p, b1_p, w2_p, b2_p)

    return out[:, :L]


def reference_forward(h, conv_w, conv_b, w1, b1, w2, b2):
    """Pure-JAX reference mirroring the kernel's operand quantization (bf16 ops, f32 acc)."""
    f32 = jnp.float32
    x = jnp.einsum("bsd,d->bs", h.astype(f32), conv_w.reshape(-1).astype(f32))
    x = x + conv_b.astype(f32)[0]
    x = jax.nn.relu(x).astype(jnp.bfloat16).astype(f32)
    y = x @ w1.astype(f32) + b1.reshape(1, -1).astype(f32)
    y = jax.nn.relu(y).astype(jnp.bfloat16).astype(f32)
    return y @ w2.astype(f32) + b2.reshape(1, -1).astype(f32)


if __name__ == "__main__":
    # Small shapes consistent with the module's forward:
    B = 16    # batch
    S = 8     # max_seq_len
    D = 32    # encoder dim
    H0 = 16   # pred_head hidden_size[0]
    L = 4     # num_labels

    key = jax.random.PRNGKey(0)
    k_h, k_cw, k_cb, k_w1, k_b1, k_w2, k_b2 = jax.random.split(key, 7)

    # Stand-in for the pretrained cell-encoder encodings (bf16, as a real encoder emits).
    h = jax.random.normal(k_h, (B, S, D), dtype=jnp.float32).astype(jnp.bfloat16)

    conv_w = (jax.random.uniform(k_cw, (D,), jnp.float32, -1.0, 1.0) / jnp.sqrt(D)).astype(jnp.bfloat16)
    conv_b = jax.random.uniform(k_cb, (1,), jnp.float32, -1.0, 1.0) / jnp.sqrt(D)
    w1 = (jax.random.uniform(k_w1, (S, H0), jnp.float32, -1.0, 1.0) / jnp.sqrt(S)).astype(jnp.bfloat16)
    b1 = jax.random.uniform(k_b1, (H0,), jnp.float32, -1.0, 1.0) / jnp.sqrt(S)
    w2 = (jax.random.uniform(k_w2, (H0, L), jnp.float32, -1.0, 1.0) / jnp.sqrt(H0)).astype(jnp.bfloat16)
    b2 = jax.random.uniform(k_b2, (L,), jnp.float32, -1.0, 1.0) / jnp.sqrt(H0)

    out = ctc_forward(h, conv_w, conv_b, w1, b1, w2, b2)   # auto tb -> 8, 2-step grid
    out = jax.block_until_ready(out)

    ref = reference_forward(h, conv_w, conv_b, w1, b1, w2, b2)
    assert out.shape == (B, L)
    max_err = float(jnp.max(jnp.abs(out - ref)))
    assert jnp.allclose(out, ref, atol=5e-3, rtol=5e-3), f"mismatch vs reference (max abs err {max_err})"

    print("KERNEL_OK")
</pallas_src>

<mosaic_0001>
module attributes {stable_mosaic.version = 11 : i64} {
  func.func @ctc_head_kernel(%arg0: i32, %arg1: memref<8x8x32xbf16, #tpu.memory_space<vmem>>, %arg2: memref<1x8x32xbf16, #tpu.memory_space<vmem>>, %arg3: memref<1x1xf32, #tpu.memory_space<smem>>, %arg4: memref<8x128xbf16, #tpu.memory_space<vmem>>, %arg5: memref<1x128xf32, #tpu.memory_space<vmem>>, %arg6: memref<128x128xbf16, #tpu.memory_space<vmem>>, %arg7: memref<1x128xf32, #tpu.memory_space<vmem>>, %arg8: memref<8x128xf32, #tpu.memory_space<vmem>>) attributes {dimension_semantics = [#tpu.dimension_semantics<parallel>], iteration_bounds = array<i64: 2>, scalar_prefetch = 0 : i64, scratch_operands = 0 : i64, tpu.core_type = #tpu.core_type<tc>, window_params = [{transform_indices = @transform_0, window_bounds = array<i64: 8, 8, 32>}, {pipeline_mode = #tpu.pipeline_mode<synchronous>, transform_indices = @transform_1, window_bounds = array<i64: 1, 8, 32>}, {transform_indices = @transform_2, window_bounds = array<i64: 1, 1>}, {pipeline_mode = #tpu.pipeline_mode<synchronous>, transform_indices = @transform_3, window_bounds = array<i64: 8, 128>}, {pipeline_mode = #tpu.pipeline_mode<synchronous>, transform_indices = @transform_4, window_bounds = array<i64: 1, 128>}, {pipeline_mode = #tpu.pipeline_mode<synchronous>, transform_indices = @transform_5, window_bounds = array<i64: 128, 128>}, {pipeline_mode = #tpu.pipeline_mode<synchronous>, transform_indices = @transform_6, window_bounds = array<i64: 1, 128>}, {transform_indices = @transform_7, window_bounds = array<i64: 8, 128>}]} {
    %c0 = arith.constant 0 : index
    %c0_0 = arith.constant 0 : index
    %c0_1 = arith.constant 0 : index
    %0 = vector.load %arg1[%c0, %c0_0, %c0_1] : memref<8x8x32xbf16, #tpu.memory_space<vmem>>, vector<8x8x32xbf16>
    %c0_2 = arith.constant 0 : index
    %c0_3 = arith.constant 0 : index
    %c0_4 = arith.constant 0 : index
    %1 = vector.load %arg2[%c0_2, %c0_3, %c0_4] : memref<1x8x32xbf16, #tpu.memory_space<vmem>>, vector<1x8x32xbf16>
    %2 = vector.shape_cast %1 : vector<1x8x32xbf16> to vector<1x8x32xbf16>
    %3 = vector.broadcast %2 : vector<1x8x32xbf16> to vector<8x8x32xbf16>
    "tpu.trace_start"() <{level = 10 : i32, message = "bsd,bkd->bsk"}> : () -> ()
    %cst = arith.constant dense<0.000000e+00> : vector<8x8x8xf32>
    %4 = tpu.matmul %0, %3, %cst {dimension_numbers = #tpu.dot_dimension_numbers<[2], [2], [1], [1], [0, 0, 0, 1, 1, 1], [0], [0]>} : vector<8x8x32xbf16>, vector<8x8x32xbf16>, vector<8x8x8xf32> -> vector<8x8x8xf32>
    "tpu.trace_stop"() : () -> ()
    %cst_5 = arith.constant dense<0.000000e+00> : vector<8x8xf32>
    %5 = vector.multi_reduction <add>, %4, %cst_5 [2] : vector<8x8x8xf32> to vector<8x8xf32>
    %c0_6 = arith.constant 0 : index
    %c0_7 = arith.constant 0 : index
    %6 = memref.load %arg3[%c0_6, %c0_7] : memref<1x1xf32, #tpu.memory_space<smem>>
    %7 = vector.broadcast %6 : f32 to vector<8x8xf32>
    %8 = arith.addf %5, %7 : vector<8x8xf32>
    %cst_8 = arith.constant 0.000000e+00 : f32
    %9 = vector.broadcast %cst_8 : f32 to vector<8x8xf32>
    %10 = arith.maximumf %8, %9 : vector<8x8xf32>
    %11 = arith.truncf %10 : vector<8x8xf32> to vector<8x8xbf16>
    %c0_9 = arith.constant 0 : index
    %c0_10 = arith.constant 0 : index
    %12 = vector.load %arg4[%c0_9, %c0_10] : memref<8x128xbf16, #tpu.memory_space<vmem>>, vector<8x128xbf16>
    %cst_11 = arith.constant dense<0.000000e+00> : vector<8x128xf32>
    %13 = tpu.matmul %11, %12, %cst_11 {dimension_numbers = #tpu.dot_dimension_numbers<[1], [0], [0], [1], [0, 0, 1, 1], [], []>} : vector<8x8xbf16>, vector<8x128xbf16>, vector<8x128xf32> -> vector<8x128xf32>
    %c0_12 = arith.constant 0 : index
    %c0_13 = arith.constant 0 : index
    %14 = vector.load %arg5[%c0_12, %c0_13] : memref<1x128xf32, #tpu.memory_space<vmem>>, vector<1x128xf32>
    %15 = vector.broadcast %14 : vector<1x128xf32> to vector<8x128xf32>
    %16 = arith.addf %13, %15 : vector<8x128xf32>
    %cst_14 = arith.constant 0.000000e+00 : f32
    %17 = vector.broadcast %cst_14 : f32 to vector<8x128xf32>
    %18 = arith.maximumf %16, %17 : vector<8x128xf32>
    %19 = arith.truncf %18 : vector<8x128xf32> to vector<8x128xbf16>
    %c0_15 = arith.constant 0 : index
    %c0_16 = arith.constant 0 : index
    %20 = vector.load %arg6[%c0_15, %c0_16] : memref<128x128xbf16, #tpu.memory_space<vmem>>, vector<128x128xbf16>
    %cst_17 = arith.constant dense<0.000000e+00> : vector<8x128xf32>
    %21 = tpu.matmul %19, %20, %cst_17 {dimension_numbers = #tpu.dot_dimension_numbers<[1], [0], [0], [1], [0, 0, 1, 1], [], []>} : vector<8x128xbf16>, vector<128x128xbf16>, vector<8x128xf32> -> vector<8x128xf32>
    %c0_18 = arith.constant 0 : index
    %c0_19 = arith.constant 0 : index
    %22 = vector.load %arg7[%c0_18, %c0_19] : memref<1x128xf32, #tpu.memory_space<vmem>>, vector<1x128xf32>
    %23 = vector.broadcast %22 : vector<1x128xf32> to vector<8x128xf32>
    %24 = arith.addf %21, %23 : vector<8x128xf32>
    %c0_20 = arith.constant 0 : index
    %c0_21 = arith.constant 0 : index
    %25 = vector.load %arg8[%c0_20, %c0_21] : memref<8x128xf32, #tpu.memory_space<vmem>>, vector<8x128xf32>
    tpu.vector_store %arg8[%c0_20, %c0_21], %24 {strides = array<i32>} : memref<8x128xf32, #tpu.memory_space<vmem>>, vector<8x128xf32>,
    return
  }
  func.func @transform_0(%arg0: i32) -> (i32, i32, i32) {
    %c0_i32 = arith.constant 0 : i32
    %c0_i32_0 = arith.constant 0 : i32
    %c0_i32_1 = arith.constant 0 : i32
    return %arg0, %c0_i32, %c0_i32_0 : i32, i32, i32
  }
  func.func @transform_1(%arg0: i32) -> (i32, i32, i32) {
    %c0_i32 = arith.constant 0 : i32
    %c0_i32_0 = arith.constant 0 : i32
    %c0_i32_1 = arith.constant 0 : i32
    %c0_i32_2 = arith.constant 0 : i32
    return %c0_i32, %c0_i32_0, %c0_i32_1 : i32, i32, i32
  }
  func.func @transform_2(%arg0: i32) -> (i32, i32) {
    %c0_i32 = arith.constant 0 : i32
    %c0_i32_0 = arith.constant 0 : i32
    %c0_i32_1 = arith.constant 0 : i32
    return %c0_i32, %c0_i32_0 : i32, i32
  }
  func.func @transform_3(%arg0: i32) -> (i32, i32) {
    %c0_i32 = arith.constant 0 : i32
    %c0_i32_0 = arith.constant 0 : i32
    %c0_i32_1 = arith.constant 0 : i32
    return %c0_i32, %c0_i32_0 : i32, i32
  }
  func.func @transform_4(%arg0: i32) -> (i32, i32) {
    %c0_i32 = arith.constant 0 : i32
    %c0_i32_0 = arith.constant 0 : i32
    %c0_i32_1 = arith.constant 0 : i32
    return %c0_i32, %c0_i32_0 : i32, i32
  }
  func.func @transform_5(%arg0: i32) -> (i32, i32) {
    %c0_i32 = arith.constant 0 : i32
    %c0_i32_0 = arith.constant 0 : i32
    %c0_i32_1 = arith.constant 0 : i32
    return %c0_i32, %c0_i32_0 : i32, i32
  }
  func.func @transform_6(%arg0: i32) -> (i32, i32) {
    %c0_i32 = arith.constant 0 : i32
    %c0_i32_0 = arith.constant 0 : i32
    %c0_i32_1 = arith.constant 0 : i32
    return %c0_i32, %c0_i32_0 : i32, i32
  }
  func.func @transform_7(%arg0: i32) -> (i32, i32) {
    %c0_i32 = arith.constant 0 : i32
    %c0_i32_0 = arith.constant 0 : i32
    return %arg0, %c0_i32 : i32, i32
  }
}

</mosaic_0001>

<bundles_post_ra>
// kernel: ctc_forward.1
= control target key start
LH: loop header
LB: loop body
LE: loop exit
PB: predicated region body
PF: predicated region fallthrough
CT: control target
= control target key end

     0   :  { %s796_s26 = smov 0   ;;  %s872_s0 = inlined_call_operand.vmem [shape: bf16[16,8,32], index: 0, kind: input, shape index: {}]   ;;  %s873_s1 = inlined_call_operand.vmem [shape: bf16[1,8,32], index: 1, kind: input, shape index: {}]   ;;  %s874_s2 = inlined_call_operand.<no memory space> [shape: f32[1,1], index: 2, kind: input, shape index: {}]   ;;  %s875_s3 = inlined_call_operand.vmem [shape: bf16[8,128], index: 3, kind: input, shape index: {}]   ;;  %s876_s4 = inlined_call_operand.vmem [shape: f32[1,128], index: 4, kind: input, shape index: {}]   ;;  %s877_s5 = inlined_call_operand.vmem [shape: bf16[128,128], index: 5, kind: input, shape index: {}]   ;;  %s878_s6 = inlined_call_operand.vmem [shape: f32[1,128], index: 6, kind: input, shape index: {}]   ;;  %s879_s7 = inlined_call_operand.vmem [shape: f32[16,128], index: 7, kind: output, shape index: {}]  }
   0x1   :  { %12 = sst [smem:[#allocation2]] %s874_s2 }
   0x2 LB: > { %s802_s27 = sadd.s32 4294967295, %s751_s26   ;;  %p680_p0 = scmp.ge.s32.totalorder %s751_s26, 1  ;;  %s751_s26 = sphi %s796_s26, %s18_s26  }
   0x3   : > { %p239_p1 = scmp.lt.s32.totalorder %s751_s26, 3 }
   0x5   : > { %p240_p2 = pnand %p680_p0, %p239_p1 }
   0x6   : > { %s681_s2 = sshll.u32 (!%p240_p2), %s802_s27, 3  ;;  %s447_s13 = sld [smem:[#allocation2]] (!%p240_p2) }
   0x7   : > { %243 = sbr.rel (%p240_p2) target bundleno = 582 (0x246), region = 48  ;;  %p271_p3 = scmp.lt.s32.totalorder (!%p240_p2), %s681_s2, 15 }
   0x8   : > { %p276_p4 = scmp.lt.s32.totalorder (!%p240_p2), %s802_s27, 1 }
   0xc   : > { %v289_v0 = vld [vmem:[%s873_s1] sm:$0xf]  ;;  %vm290_vm0 = vcmask 261120   ;;  %s881_s2 = smov (!%p271_p3, %s681_s2), 15  ;;  %vm422_vm1 = vcmask 64512   ;;  %vm522_vm2 = vcmask 1043456   ;;  %v448_v38 = vstv %s447_s13 }
   0xd   : > { %v295_v1 = vsel %vm290_vm0, %v289_v0, 0  ;;  %s682_s30 = sshll.u32 %s881_s2, 2  ;;  %v473_v34 = vld [vmem:[%s875_s3] sm:$0xf]  ;;  %v734_v43 = vld [vmem:[%s877_s5 + $0x38] sm:$0xff]  ;;  %v733_v49 = vld [vmem:[%s877_s5 + $0x30] sm:$0xff]  ;;  %v494_v53 = vlaneseq }
   0xe   : > { %304 = vmatpush.bf16.xpose.msra.mxu0 %v295_v1  ;;  %320 = vmatpush.bf16.xpose.msra.mxu2 %v295_v1  ;;  %s274_s10 = scalar_lea.vmem %s872_s0, %s682_s30  ;;  %v524_v36 = vsel %vm522_vm2, %v473_v34, 0  ;;  %v732_v58 = vld [vmem:[%s877_s5 + $0x28] sm:$0xff]  ;;  %vm504_vm3 = vcmask 1041409   ;;  %vm506_vm4 = vcmask 1042434   ;;  %vm508_vm5 = vcmask 1043459   ;;  %s883_s27 = smov (!%p276_p4, %s802_s27), 1 }
   0xf   : > { %352 = vmatpush.bf16.xpose.msra.mxu3 %v295_v1  ;;  %384 = vmatpush.bf16.xpose.msra.mxu1 %v295_v1  ;;  %v281_v2 = vld [vmem:[%s274_s10] sm:$0xf]  ;;  %v282_v3 = vld [vmem:[%s274_s10 + $0x4] sm:$0xf]  ;;  %v284_v4 = vld [vmem:[%s274_s10 + $0xc] sm:$0xf] }
  0x10   : > { %v286_v5 = vld [vmem:[%s274_s10 + $0x14] sm:$0xf]  ;;  %v283_v6 = vld [vmem:[%s274_s10 + $0x8] sm:$0xf]  ;;  %v285_v7 = vld [vmem:[%s274_s10 + $0x10] sm:$0xf] }
  0x11   : > { %v288_v8 = vld [vmem:[%s274_s10 + $0x1c] sm:$0xf]  ;;  %v287_v9 = vld [vmem:[%s274_s10 + $0x18] sm:$0xf]  ;;  %v495_v61 = vand.u32 127, %v494_v53  ;;  %vm510_vm6 = vcmask 1044484  }
  0x12   : > { %vm512_vm7 = vcmask 1045509   ;;  %vm514_vm8 = vcmask 1046534   ;;  %vm516_vm9 = vcmask 1047559   ;;  %s683_s10 = sshll.u32 %s883_s27, 3 }
  0x13   : > { %s279_s15 = scalar_lea.vmem %s879_s7, %s683_s10 }
  0x15   : > { %684 = vmatmul.msk.bf16.vlgmr.msra.gmra.mxu0 %vm290_vm0, %v281_v2  ;;  %685 = vmatmul.msk.bf16.vlgmr.msra.gmra.mxu2 %vm290_vm0, %v282_v3 }
  0x16   : > { %336 = vmatpush.bf16.xpose.msrb.mxu2 %v295_v1  ;;  %368 = vmatpush.bf16.xpose.msrb.mxu0 %v295_v1 }
  0x17   : > { %416 = vmatpush.bf16.xpose.msrb.mxu3 %v295_v1  ;;  %689 = vmatmul.msk.bf16.vlgmr.msra.gmra.mxu1 %vm290_vm0, %v286_v5 }
  0x18   : > { %687 = vmatmul.msk.bf16.vlgmr.msra.gmra.mxu3 %vm290_vm0, %v284_v4  ;;  %609 = vmatpush.bf16.msrb.mxu1 %v734_v43  ;;  %v731_v4 = vld [vmem:[%s877_s5 + $0x20] sm:$0xff] }
  0x1c   : > { %610 = vmatpush.bf16.msrb.mxu1 %v733_v49 }
  0x1e   : > { %400 = vmatpush.bf16.xpose.msra.mxu2 %v295_v1  ;;  %533 = vmatpush.bf16.msra.mxu0 %v524_v36 }
  0x20   : > { %611 = vmatpush.bf16.msrb.mxu1 %v732_v58 }
  0x24   : > { %612 = vmatpush.bf16.msrb.mxu1 %v731_v4 }
  0x25   : > { %686 = vmatmul.msk.bf16.vlgmr.msrb.gmra.mxu2 %vm290_vm0, %v283_v6  ;;  %688 = vmatmul.msk.bf16.vlgmr.msrb.gmra.mxu0 %vm290_vm0, %v285_v7 }
  0x28   : > { %691 = vmatmul.msk.bf16.vlgmr.msrb.gmra.mxu3 %vm290_vm0, %v288_v8 }
  0x35   : > { %690 = vmatmul.msk.bf16.vlgmr.msra.gmra.mxu2 %vm290_vm0, %v287_v9 }
  0x92   : > { %v306_v10 = vpop.f32.mrf.mxu0 }
  0x93   : > { %v423_v11 = vsel %vm422_vm1, %v306_v10, 0.0 }
  0x94   : > { %424 = vadd.xlane.f32.xlu0 %v423_v11  ;;  %v386_v12 = vpop.f32.mrf.mxu1 }
  0x95   : > { %v438_v25 = vsel %vm422_vm1, %v386_v12, 0.0  ;;  %v730_v12 = vld [vmem:[%s877_s5 + $0x18] sm:$0xff] }
  0x96   : > { %613 = vmatpush.bf16.msrb.mxu1 %v730_v12 }
  0x98   : > { %v322_v13 = vpop.f32.mrf.mxu2 }
  0x99   : > { %v426_v17 = vsel %vm422_vm1, %v322_v13, 0.0 }
  0x9a   : > { %v308_v15 = vpop.f32.mrf.mxu0 }
  0x9b   : > { %v354_v14 = vpop.f32.mrf.mxu3 }
  0x9c   : > { %v432_v16 = vsel %vm422_vm1, %v354_v14, 0.0  ;;  %427 = vadd.xlane.f32.xlu0 %v426_v17  ;;  %v388_v18 = vpop.f32.mrf.mxu1 }
  0x9d   : > { %433 = vadd.xlane.f32.xlu1 %v432_v16 }
  0xa0   : > { %v324_v19 = vpop.f32.mrf.mxu2 }
  0xa2   : > { %v370_v21 = vpop.f32.mrf.mxu0 }
  0xa3   : > { %v356_v20 = vpop.f32.mrf.mxu3  ;;  %v435_v22 = vsel %vm422_vm1, %v370_v21, 0.0  ;;  %v729_v21 = vld [vmem:[%s877_s5 + $0x10] sm:$0xff] }
  0xa4   : > { %436 = vadd.xlane.f32.xlu2 %v435_v22  ;;  %614 = vmatpush.bf16.msrb.mxu1 %v729_v21 }
  0xa8   : > { %v338_v23 = vpop.f32.mrf.mxu2 }
  0xa9   : > { %v429_v24 = vsel %vm422_vm1, %v338_v23, 0.0 }
  0xaa   : > { %430 = vadd.xlane.f32.xlu1 %v429_v24  ;;  %v372_v27 = vpop.f32.mrf.mxu0 }
  0xab   : > { %v418_v26 = vpop.f32.mrf.mxu3 }
  0xac   : > { %439 = vadd.xlane.f32.xlu2 %v438_v25  ;;  %v444_v28 = vsel %vm422_vm1, %v418_v26, 0.0 }
  0xb0   : > { %v340_v29 = vpop.f32.mrf.mxu2 }
  0xb2   : > { %445 = vadd.xlane.f32.xlu1 %v444_v28 }
  0xb3   : > { %v420_v30 = vpop.f32.mrf.mxu3 }
  0xb8   : > { %v402_v31 = vpop.f32.mrf.mxu2 }
  0xb9   : > { %v441_v32 = vsel %vm422_vm1, %v402_v31, 0.0 }
  0xba   : > { %442 = vadd.xlane.f32.xlu0 %v441_v32 }
  0xc0   : > { %v404_v33 = vpop.f32.mrf.mxu2 }
 0x107   : > { %v425_v35 = vpop.xlane.xlu0 %424 }
 0x108   : > { %v449_v41 = vadd.f32 %v448_v38, %v425_v35 }
 0x10a   : > { %v457_v44 = vmax.f32 %v449_v41, 0.0 }
 0x10c   : > { %v465_v54 = vpack.c.bf16 %v457_v44, %v457_v44 }
 0x10e   : > { %v486_v62 = vunpack.c.l.b16 %v465_v54 }
 0x10f   : > { %v428_v39 = vpop.xlane.xlu0 %427 }
 0x110   : > { %v434_v37 = vpop.xlane.xlu1 %433  ;;  %v450_v42 = vadd.f32 %v448_v38, %v428_v39  ;;  %v496_v7 = vperm.slane %v486_v62, %v495_v61  ;;  %v743_v39 = vld [vmem:[%s876_s4] ss:$0 sm:$0xff] }
 0x111   : > { %v452_v46 = vadd.f32 %v448_v38, %v434_v37  ;;  %v728_v37 = vld [vmem:[%s877_s5 + $0x8] sm:$0xff] }
 0x112   : > { %v458_v45 = vmax.f32 %v450_v42, 0.0  ;;  %615 = vmatpush.bf16.msrb.mxu1 %v728_v37 }
 0x113   : > { %v460_v56 = vmax.f32 %v452_v46, 0.0 }
 0x114   : > { %v466_v55 = vpack.c.bf16 %v458_v45, %v458_v45  ;;  %v744_v45 = vld [vmem:[%s878_s6] ss:$0 sm:$0xff] }
 0x115   : > { %v468_v0 = vpack.c.bf16 %v460_v56, %v460_v56 }
 0x116   : > { %v487_v63 = vunpack.c.l.b16 %v466_v55 }
 0x117   : > { %v437_v40 = vpop.xlane.xlu2 %436  ;;  %v489_v9 = vunpack.c.l.b16 %v468_v0 }
 0x118   : > { %v453_v50 = vadd.f32 %v448_v38, %v437_v40  ;;  %v497_v8 = vperm.slane %v487_v63, %v495_v61 }
 0x119   : > { %v499_v16 = vperm.slane %v489_v9, %v495_v61 }
 0x11a   : > { %v461_v60 = vmax.f32 %v453_v50, 0.0  ;;  %v505_v15 = vsel %vm504_vm3, %v497_v8, %v496_v7 }
 0x11c   : > { %v469_v6 = vpack.c.bf16 %v461_v60, %v461_v60 }
 0x11d   : > { %v431_v47 = vpop.xlane.xlu1 %430 }
 0x11e   : > { %v451_v48 = vadd.f32 %v448_v38, %v431_v47  ;;  %v490_v14 = vunpack.c.l.b16 %v469_v6 }
 0x11f   : > { %v440_v52 = vpop.xlane.xlu2 %439 }
 0x120   : > { %v459_v51 = vmax.f32 %v451_v48, 0.0  ;;  %v454_v59 = vadd.f32 %v448_v38, %v440_v52  ;;  %v500_v23 = vperm.slane %v490_v14, %v495_v61 }
 0x122   : > { %v467_v57 = vpack.c.bf16 %v459_v51, %v459_v51  ;;  %v462_v5 = vmax.f32 %v454_v59, 0.0 }
 0x124   : > { %v488_v2 = vunpack.c.l.b16 %v467_v57  ;;  %v470_v13 = vpack.c.bf16 %v462_v5, %v462_v5 }
 0x125   : > { %v446_v1 = vpop.xlane.xlu1 %445 }
 0x126   : > { %v456_v3 = vadd.f32 %v448_v38, %v446_v1  ;;  %v498_v11 = vperm.slane %v488_v2, %v495_v61  ;;  %v491_v22 = vunpack.c.l.b16 %v470_v13 }
 0x128   : > { %v464_v10 = vmax.f32 %v456_v3, 0.0  ;;  %v507_v19 = vsel %vm506_vm4, %v498_v11, %v505_v15  ;;  %v501_v28 = vperm.slane %v491_v22, %v495_v61 }
 0x129   : > { %v509_v25 = vsel %vm508_vm5, %v499_v16, %v507_v19 }
 0x12a   : > { %v472_v18 = vpack.c.bf16 %v464_v10, %v464_v10  ;;  %v511_v29 = vsel %vm510_vm6, %v500_v23, %v509_v25 }
 0x12b   : > { %v513_v33 = vsel %vm512_vm7, %v501_v28, %v511_v29 }
 0x12c   : > { %v493_v26 = vunpack.c.l.b16 %v472_v18 }
 0x12d   : > { %v443_v17 = vpop.xlane.xlu0 %442 }
 0x12e   : > { %v455_v20 = vadd.f32 %v448_v38, %v443_v17  ;;  %v503_v31 = vperm.slane %v493_v26, %v495_v61  ;;  %v727_v38 = vld [vmem:[%s877_s5] sm:$0xff] }
 0x12f   : > { %616 = vmatpush.bf16.msrb.mxu1 %v727_v38 }
 0x130   : > { %v463_v24 = vmax.f32 %v455_v20, 0.0 }
 0x132   : > { %v471_v27 = vpack.c.bf16 %v463_v24, %v463_v24 }
 0x134   : > { %v492_v30 = vunpack.c.l.b16 %v471_v27 }
 0x136   : > { %v502_v32 = vperm.slane %v492_v30, %v495_v61 }
 0x138   : > { %v515_v34 = vsel %vm514_vm8, %v502_v32, %v513_v33 }
 0x139   : > { %v517_v35 = vsel %vm516_vm9, %v503_v31, %v515_v34 }
 0x13a   : > { %v518_v36 = vpack.c.b16 %v517_v35, %v517_v35 }
 0x13c   : > { %692 = vmatmul.msk.bf16.vlgmr.msra.gmra.mxu0 %vm422_vm1, %v518_v36 }
 0x1b9   : > { %v535_v40 = vpop.f32.mrf.mxu0 }
 0x1ba   : > { %v536_v41 = vadd.f32 %v743_v39, %v535_v40 }
 0x1bc   : > { %v539_v42 = vmax.f32 %v536_v41, 0.0 }
 0x1be   : > { %v540_v43 = vpack.c.bf16 %v539_v42, %v539_v42 }
 0x1c0   : > { %617 = vmatmul.bf16.vlgmr.msrb.gmra.mxu1 %v540_v43 }
 0x1c1   : > { %v537_v44 = vpop.f32.mrf.mxu0 }
 0x23d   : > { %v618_v46 = vpop.f32.mrf.mxu1 }
 0x23e   : > { %v619_v47 = vadd.f32 %v744_v45, %v618_v46 }
 0x240   : > { %622 = vst [vmem:[%s279_s15] sm:$0xff] %v619_v47 }
 0x245   : > { %v620_v48 = vpop.f32.mrf.mxu1 }
 0x246 PF: > { %s18_s26 = sadd.s32 1, %s751_s26  }
 0x247   : > { %p15_p5 = scmp.ge.s32.totalorder %s18_s26, 4  }
 0x249   :  { %17 = sbr.rel (!%p15_p5) target bundleno = 2 (0x2), region = 78 }

</bundles_post_ra>
